<compile_context>
chip_gen: v7x
topology: tpu7x:2x2x1
jax: 0.10.0
libtpu: 0.0.40
codegen_flags: <defaults>
</compile_context>

<pallas_src>
import functools
import math

import jax
import jax.numpy as jnp
from jax.experimental import pallas as pl
from jax.experimental.pallas import tpu as pltpu


def _vmem_budget_bytes():
    """Per-chip scoped-VMEM budget: physical capacity minus compiler headroom."""
    cap = 64 * 1024 * 1024  # conservative default (v7x physical VMEM)
    try:
        cap = int(pltpu.get_tpu_info().vmem_capacity_bytes)
    except Exception:
        pass
    return max(cap - 16 * 1024 * 1024, 32 * 1024 * 1024)


def _heads_per_group(head_num, hs):
    """Smallest head group whose column width is lane-dense (multiple of 128),
    falling back to all heads (block width == full hidden dim)."""
    for g in range(1, head_num + 1):
        if head_num % g == 0 and (g * hs) % 128 == 0:
            return g
    return head_num


def _pick_row_tile(n_rows, H, budget_bytes):
    """Largest row tile dividing n_rows whose streamed footprint fits budget."""
    for c in (2048, 1024, 512, 256, 128, 64, 32, 16, 8):
        # 4 f32 input streams + 3 output streams, double-buffered (f32 worst case).
        if n_rows % c == 0 and 7 * c * H * 4 * 2 <= budget_bytes:
            return c
    return n_rows


def _pick_q_tile(L, ghs, budget_bytes):
    """Largest q tile dividing L; resident K/V + scores must fit the budget."""
    for c in (256, 128, 64, 32, 16, 8):  # >256 gains nothing on 2x256^2/4x128^2 MXUs
        if L % c != 0:
            continue
        footprint = (2 * L * ghs * 4 * 2      # K/V blocks (worst-case f32), 2-buffered
                     + 2 * c * ghs * 4 * 2    # Q block + out block
                     + c * L * (1 * 2 + 4))   # int8 mask (2-buf) + f32 scores
        if footprint <= budget_bytes:
            return c
    return L


def _qkv_proj_kernel(xq_ref, xk_ref, posk_ref, posv_ref,
                     wq_ref, bq_ref, wk_ref, bk_ref, wv_ref, bv_ref,
                     q_out_ref, kp_out_ref, vp_out_ref, *, scale, compute_dtype):
    """One grid step == one tile of B*L rows; full-H contraction feeds the MXU."""
    xq = xq_ref[...].astype(compute_dtype)
    xk = xk_ref[...].astype(compute_dtype)
    q = jnp.dot(xq, wq_ref[...], preferred_element_type=jnp.float32) + bq_ref[...]
    k = jnp.dot(xk, wk_ref[...], preferred_element_type=jnp.float32) + bk_ref[...]
    v = jnp.dot(xk, wv_ref[...], preferred_element_type=jnp.float32) + bv_ref[...]
    # Fold the softmax scale into Q once (exact: both score terms use Q).
    q_out_ref[...] = (q * jnp.float32(scale)).astype(q_out_ref.dtype)
    # Fold positional terms once (exact: slicing along hidden commutes with +).
    kp_out_ref[...] = (k + posk_ref[...].astype(jnp.float32)).astype(kp_out_ref.dtype)
    vp_out_ref[...] = (v + posv_ref[...].astype(jnp.float32)).astype(vp_out_ref.dtype)


def _attention_kernel(mask_ref, q_ref, kp_ref, vp_ref, out_ref, *,
                      g, hs, compute_dtype, approx_recip):
    """One grid step == one (batch, head-group, q-tile).

    q_ref/kp_ref/vp_ref/out_ref are lane-dense (rows, g*hs) slabs of the final
    (B, L, H) layout; K/V stay resident across q-tiles.  Scores/softmax in f32.
    """
    neg = jnp.float32(-2.0 ** 32 + 1)
    masked = mask_ref[...] != 0                     # (TQ, L) bool, shared by heads
    outs = []
    for i in range(g):                               # static, small per-group loop
        sl = slice(i * hs, (i + 1) * hs)
        q = q_ref[:, sl]                             # (TQ, hs) compute_dtype
        kp = kp_ref[:, sl]                           # (L,  hs) compute_dtype
        s = jax.lax.dot_general(q, kp, (((1,), (1,)), ((), ())),
                                preferred_element_type=jnp.float32)  # (TQ, L) f32
        s = jnp.where(masked, neg, s)
        s = s - jnp.max(s, axis=-1, keepdims=True)
        p = jnp.exp(s)                               # unnormalized probabilities
        denom = jnp.sum(p, axis=-1, keepdims=True)   # (TQ, 1)
        # TODO(synk): dropout on p skipped (eval-mode identity).
        o = jnp.dot(p.astype(compute_dtype), vp_ref[:, sl],
                    preferred_element_type=jnp.float32)              # (TQ, hs)
        # Normalize AFTER the PV matmul: TQ*hs multiplies instead of TQ*L.
        o = o * pl.reciprocal(denom, approx=approx_recip)
        outs.append(o)
    res = outs[0] if g == 1 else jnp.concatenate(outs, axis=-1)
    out_ref[...] = res.astype(out_ref.dtype)


def time_aware_mha(queries, keys, attn_mask, abs_pos_K, abs_pos_V, params,
                   head_num, *, compute_dtype=jnp.bfloat16):
    B, L, H = queries.shape
    hs = H // head_num
    out_dtype = queries.dtype
    vmem_limit = _vmem_budget_bytes()
    cbytes = jnp.dtype(compute_dtype).itemsize

    # ---------- stage 1: batched QKV projection over all B*L rows ----------
    BL = B * L
    weight_bytes = 3 * H * H * cbytes * 2 + 3 * H * 4 * 2   # conservative (2-buf)
    tm = _pick_row_tile(BL, H, max(vmem_limit - weight_bytes, 1 << 20))
    n_row = max(BL // tm, 1)

    row_spec = pl.BlockSpec((tm, H), lambda i: (i, 0))
    w_spec = pl.BlockSpec((H, H), lambda i: (0, 0))     # grid-invariant
    b_spec = pl.BlockSpec((1, H), lambda i: (0, 0))     # grid-invariant
    proj_shape = jax.ShapeDtypeStruct((BL, H), compute_dtype)

    q_p, kp_p, vp_p = pl.pallas_call(
        functools.partial(_qkv_proj_kernel,
                          scale=1.0 / math.sqrt(hs),
                          compute_dtype=compute_dtype),
        grid=(n_row,),
        in_specs=[row_spec, row_spec, row_spec, row_spec,
                  w_spec, b_spec, w_spec, b_spec, w_spec, b_spec],
        out_specs=(row_spec, row_spec, row_spec),
        out_shape=(proj_shape, proj_shape, proj_shape),
        compiler_params=pltpu.CompilerParams(
            dimension_semantics=("parallel",),
            vmem_limit_bytes=vmem_limit),
    )(queries.reshape(BL, H), keys.reshape(BL, H),
      abs_pos_K.reshape(BL, H), abs_pos_V.reshape(BL, H),
      params["wq"].astype(compute_dtype), params["bq"].astype(jnp.float32),
      params["wk"].astype(compute_dtype), params["bk"].astype(jnp.float32),
      params["wv"].astype(compute_dtype), params["bv"].astype(jnp.float32))

    # Free reshapes only (row-major split of the leading axis) — no transposes.
    q_p = q_p.reshape(B, L, H)
    kp_p = kp_p.reshape(B, L, H)
    vp_p = vp_p.reshape(B, L, H)
    mask_i8 = attn_mask.astype(jnp.int8)   # 4x less HBM traffic than f32 mask

    # ---------- stage 2: attention, grid = (batch, head-group, q-tile) ------
    g = _heads_per_group(head_num, hs)     # lane-dense head grouping
    n_groups = head_num // g
    ghs = g * hs
    tq = _pick_q_tile(L, ghs, vmem_limit)
    n_q = max(L // tq, 1)

    q_spec = pl.BlockSpec((None, tq, ghs), lambda b, hg, qi: (b, qi, hg))
    kv_spec = pl.BlockSpec((None, L, ghs), lambda b, hg, qi: (b, 0, hg))
    mask_spec = pl.BlockSpec((tq, L), lambda b, hg, qi: (qi, 0))
    out_spec = pl.BlockSpec((None, tq, ghs), lambda b, hg, qi: (b, qi, hg))

    out = pl.pallas_call(
        functools.partial(_attention_kernel,
                          g=g, hs=hs, compute_dtype=compute_dtype,
                          approx_recip=(compute_dtype != jnp.float32)),
        grid=(B, n_groups, n_q),
        in_specs=[mask_spec, q_spec, kv_spec, kv_spec],
        out_specs=out_spec,
        out_shape=jax.ShapeDtypeStruct((B, L, H), out_dtype),
        compiler_params=pltpu.CompilerParams(
            dimension_semantics=("parallel", "parallel", "parallel"),
            vmem_limit_bytes=vmem_limit),
    )(mask_i8, q_p, kp_p, vp_p)

    # Output is already (B, L, H) with head h in columns [h*hs:(h+1)*hs]
    # (torch split/cat layout) — no trailing transpose/reshape.
    return out


def _reference(queries, keys, attn_mask, abs_pos_K, abs_pos_V, params, head_num):
    """Pure-JAX f32 replica of the torch forward (eval mode)."""
    B, L, H = queries.shape
    hs = H // head_num
    Q = queries @ params["wq"] + params["bq"]
    K = keys @ params["wk"] + params["bk"]
    V = keys @ params["wv"] + params["bv"]
    outs = []
    for h in range(head_num):
        sl = slice(h * hs, (h + 1) * hs)
        qh, kh, vh = Q[:, :, sl], K[:, :, sl], V[:, :, sl]
        pkh, pvh = abs_pos_K[:, :, sl], abs_pos_V[:, :, sl]
        s = jnp.einsum("bld,bmd->blm", qh, kh)
        s = s + jnp.einsum("bld,bmd->blm", qh, pkh)
        s = s / (hs ** 0.5)
        s = jnp.where(attn_mask[None, :, :], jnp.float32(-2.0 ** 32 + 1), s)
        p = jax.nn.softmax(s, axis=-1)
        o = jnp.einsum("blm,bmd->bld", p, vh) + jnp.einsum("blm,bmd->bld", p, pvh)
        outs.append(o)
    return jnp.concatenate(outs, axis=-1)


if __name__ == "__main__":
    B, L, H = 2, 8, 32
    head_num = 2
    key = jax.random.PRNGKey(0)
    ks = jax.random.split(key, 10)

    init = lambda k, shp, scale=0.1: (scale * jax.random.normal(k, shp)).astype(jnp.float32)
    params = {
        "wq": init(ks[0], (H, H)), "bq": init(ks[1], (1, H)),
        "wk": init(ks[2], (H, H)), "bk": init(ks[3], (1, H)),
        "wv": init(ks[4], (H, H)), "bv": init(ks[5], (1, H)),
    }
    queries = init(ks[6], (B, L, H), 1.0)
    keys_in = init(ks[7], (B, L, H), 1.0)
    abs_pos_K = init(ks[8], (B, L, H), 1.0)
    abs_pos_V = init(ks[9], (B, L, H), 1.0)
    # typical SASRec-style mask: disallow attending to future positions
    attn_mask = ~jnp.tril(jnp.ones((L, L), dtype=bool))

    ref = _reference(queries, keys_in, attn_mask, abs_pos_K, abs_pos_V,
                     params, head_num)

    # Algorithmic check: f32 MXU operands + exact reciprocal (tight path).
    out_f32 = time_aware_mha(queries, keys_in, attn_mask, abs_pos_K, abs_pos_V,
                             params, head_num, compute_dtype=jnp.float32)
    out_f32 = jax.block_until_ready(out_f32)
    assert out_f32.shape == (B, L, H)
    assert jnp.allclose(out_f32, ref, atol=1e-2, rtol=1e-2), \
        "f32-path mismatch vs reference"

    # Fast path: bf16 MXU operands, f32 accumulation/softmax, EUP reciprocal.
    out_bf16 = time_aware_mha(queries, keys_in, attn_mask, abs_pos_K, abs_pos_V,
                              params, head_num, compute_dtype=jnp.bfloat16)
    out_bf16 = jax.block_until_ready(out_bf16)
    assert out_bf16.shape == (B, L, H)
    assert jnp.allclose(out_bf16, ref, atol=5e-2, rtol=5e-2), \
        "bf16-path mismatch vs reference"

    print("KERNEL_OK")
</pallas_src>

<mosaic_0001>
module attributes {stable_mosaic.version = 11 : i64} {
  func.func @_qkv_proj_kernel(%arg0: i32, %arg1: memref<16x32xf32, #tpu.memory_space<vmem>>, %arg2: memref<16x32xf32, #tpu.memory_space<vmem>>, %arg3: memref<16x32xf32, #tpu.memory_space<vmem>>, %arg4: memref<16x32xf32, #tpu.memory_space<vmem>>, %arg5: memref<32x32xf32, #tpu.memory_space<vmem>>, %arg6: memref<1x32xf32, #tpu.memory_space<vmem>>, %arg7: memref<32x32xf32, #tpu.memory_space<vmem>>, %arg8: memref<1x32xf32, #tpu.memory_space<vmem>>, %arg9: memref<32x32xf32, #tpu.memory_space<vmem>>, %arg10: memref<1x32xf32, #tpu.memory_space<vmem>>, %arg11: memref<16x32xf32, #tpu.memory_space<vmem>>, %arg12: memref<16x32xf32, #tpu.memory_space<vmem>>, %arg13: memref<16x32xf32, #tpu.memory_space<vmem>>) attributes {dimension_semantics = [#tpu.dimension_semantics<parallel>], iteration_bounds = array<i64: 1>, scalar_prefetch = 0 : i64, scratch_operands = 0 : i64, tpu.core_type = #tpu.core_type<tc>, window_params = [{transform_indices = @transform_0, window_bounds = array<i64: 16, 32>}, {transform_indices = @transform_1, window_bounds = array<i64: 16, 32>}, {transform_indices = @transform_2, window_bounds = array<i64: 16, 32>}, {transform_indices = @transform_3, window_bounds = array<i64: 16, 32>}, {pipeline_mode = #tpu.pipeline_mode<synchronous>, transform_indices = @transform_4, window_bounds = array<i64: 32, 32>}, {pipeline_mode = #tpu.pipeline_mode<synchronous>, transform_indices = @transform_5, window_bounds = array<i64: 1, 32>}, {pipeline_mode = #tpu.pipeline_mode<synchronous>, transform_indices = @transform_6, window_bounds = array<i64: 32, 32>}, {pipeline_mode = #tpu.pipeline_mode<synchronous>, transform_indices = @transform_7, window_bounds = array<i64: 1, 32>}, {pipeline_mode = #tpu.pipeline_mode<synchronous>, transform_indices = @transform_8, window_bounds = array<i64: 32, 32>}, {pipeline_mode = #tpu.pipeline_mode<synchronous>, transform_indices = @transform_9, window_bounds = array<i64: 1, 32>}, {transform_indices = @transform_10, window_bounds = array<i64: 16, 32>}, {transform_indices = @transform_11, window_bounds = array<i64: 16, 32>}, {transform_indices = @transform_12, window_bounds = array<i64: 16, 32>}]} {
    %c0 = arith.constant 0 : index
    %c0_0 = arith.constant 0 : index
    %0 = vector.load %arg1[%c0, %c0_0] : memref<16x32xf32, #tpu.memory_space<vmem>>, vector<16x32xf32>
    %c0_1 = arith.constant 0 : index
    %c0_2 = arith.constant 0 : index
    %1 = vector.load %arg2[%c0_1, %c0_2] : memref<16x32xf32, #tpu.memory_space<vmem>>, vector<16x32xf32>
    %c0_3 = arith.constant 0 : index
    %c0_4 = arith.constant 0 : index
    %2 = vector.load %arg5[%c0_3, %c0_4] : memref<32x32xf32, #tpu.memory_space<vmem>>, vector<32x32xf32>
    %cst = arith.constant dense<0.000000e+00> : vector<16x32xf32>
    %3 = tpu.matmul %0, %2, %cst {dimension_numbers = #tpu.dot_dimension_numbers<[1], [0], [0], [1], [0, 0, 1, 1], [], []>} : vector<16x32xf32>, vector<32x32xf32>, vector<16x32xf32> -> vector<16x32xf32>
    %c0_5 = arith.constant 0 : index
    %c0_6 = arith.constant 0 : index
    %4 = vector.load %arg6[%c0_5, %c0_6] : memref<1x32xf32, #tpu.memory_space<vmem>>, vector<1x32xf32>
    %5 = vector.broadcast %4 : vector<1x32xf32> to vector<16x32xf32>
    %6 = arith.addf %3, %5 : vector<16x32xf32>
    %c0_7 = arith.constant 0 : index
    %c0_8 = arith.constant 0 : index
    %7 = vector.load %arg7[%c0_7, %c0_8] : memref<32x32xf32, #tpu.memory_space<vmem>>, vector<32x32xf32>
    %cst_9 = arith.constant dense<0.000000e+00> : vector<16x32xf32>
    %8 = tpu.matmul %1, %7, %cst_9 {dimension_numbers = #tpu.dot_dimension_numbers<[1], [0], [0], [1], [0, 0, 1, 1], [], []>} : vector<16x32xf32>, vector<32x32xf32>, vector<16x32xf32> -> vector<16x32xf32>
    %c0_10 = arith.constant 0 : index
    %c0_11 = arith.constant 0 : index
    %9 = vector.load %arg8[%c0_10, %c0_11] : memref<1x32xf32, #tpu.memory_space<vmem>>, vector<1x32xf32>
    %10 = vector.broadcast %9 : vector<1x32xf32> to vector<16x32xf32>
    %11 = arith.addf %8, %10 : vector<16x32xf32>
    %c0_12 = arith.constant 0 : index
    %c0_13 = arith.constant 0 : index
    %12 = vector.load %arg9[%c0_12, %c0_13] : memref<32x32xf32, #tpu.memory_space<vmem>>, vector<32x32xf32>
    %cst_14 = arith.constant dense<0.000000e+00> : vector<16x32xf32>
    %13 = tpu.matmul %1, %12, %cst_14 {dimension_numbers = #tpu.dot_dimension_numbers<[1], [0], [0], [1], [0, 0, 1, 1], [], []>} : vector<16x32xf32>, vector<32x32xf32>, vector<16x32xf32> -> vector<16x32xf32>
    %c0_15 = arith.constant 0 : index
    %c0_16 = arith.constant 0 : index
    %14 = vector.load %arg10[%c0_15, %c0_16] : memref<1x32xf32, #tpu.memory_space<vmem>>, vector<1x32xf32>
    %15 = vector.broadcast %14 : vector<1x32xf32> to vector<16x32xf32>
    %16 = arith.addf %13, %15 : vector<16x32xf32>
    %cst_17 = arith.constant 2.500000e-01 : f32
    %17 = vector.broadcast %cst_17 : f32 to vector<16x32xf32>
    %18 = arith.mulf %6, %17 : vector<16x32xf32>
    %c0_18 = arith.constant 0 : index
    %c0_19 = arith.constant 0 : index
    %19 = vector.load %arg11[%c0_18, %c0_19] : memref<16x32xf32, #tpu.memory_space<vmem>>, vector<16x32xf32>
    tpu.vector_store %arg11[%c0_18, %c0_19], %18 {strides = array<i32>} : memref<16x32xf32, #tpu.memory_space<vmem>>, vector<16x32xf32>,
    %c0_20 = arith.constant 0 : index
    %c0_21 = arith.constant 0 : index
    %20 = vector.load %arg3[%c0_20, %c0_21] : memref<16x32xf32, #tpu.memory_space<vmem>>, vector<16x32xf32>
    %21 = arith.addf %11, %20 : vector<16x32xf32>
    %c0_22 = arith.constant 0 : index
    %c0_23 = arith.constant 0 : index
    %22 = vector.load %arg12[%c0_22, %c0_23] : memref<16x32xf32, #tpu.memory_space<vmem>>, vector<16x32xf32>
    tpu.vector_store %arg12[%c0_22, %c0_23], %21 {strides = array<i32>} : memref<16x32xf32, #tpu.memory_space<vmem>>, vector<16x32xf32>,
    %c0_24 = arith.constant 0 : index
    %c0_25 = arith.constant 0 : index
    %23 = vector.load %arg4[%c0_24, %c0_25] : memref<16x32xf32, #tpu.memory_space<vmem>>, vector<16x32xf32>
    %24 = arith.addf %16, %23 : vector<16x32xf32>
    %c0_26 = arith.constant 0 : index
    %c0_27 = arith.constant 0 : index
    %25 = vector.load %arg13[%c0_26, %c0_27] : memref<16x32xf32, #tpu.memory_space<vmem>>, vector<16x32xf32>
    tpu.vector_store %arg13[%c0_26, %c0_27], %24 {strides = array<i32>} : memref<16x32xf32, #tpu.memory_space<vmem>>, vector<16x32xf32>,
    return
  }
  func.func @transform_0(%arg0: i32) -> (i32, i32) {
    %c0_i32 = arith.constant 0 : i32
    %c0_i32_0 = arith.constant 0 : i32
    return %arg0, %c0_i32 : i32, i32
  }
  func.func @transform_1(%arg0: i32) -> (i32, i32) {
    %c0_i32 = arith.constant 0 : i32
    %c0_i32_0 = arith.constant 0 : i32
    return %arg0, %c0_i32 : i32, i32
  }
  func.func @transform_2(%arg0: i32) -> (i32, i32) {
    %c0_i32 = arith.constant 0 : i32
    %c0_i32_0 = arith.constant 0 : i32
    return %arg0, %c0_i32 : i32, i32
  }
  func.func @transform_3(%arg0: i32) -> (i32, i32) {
    %c0_i32 = arith.constant 0 : i32
    %c0_i32_0 = arith.constant 0 : i32
    return %arg0, %c0_i32 : i32, i32
  }
  func.func @transform_4(%arg0: i32) -> (i32, i32) {
    %c0_i32 = arith.constant 0 : i32
    %c0_i32_0 = arith.constant 0 : i32
    %c0_i32_1 = arith.constant 0 : i32
    return %c0_i32, %c0_i32_0 : i32, i32
  }
  func.func @transform_5(%arg0: i32) -> (i32, i32) {
    %c0_i32 = arith.constant 0 : i32
    %c0_i32_0 = arith.constant 0 : i32
    %c0_i32_1 = arith.constant 0 : i32
    return %c0_i32, %c0_i32_0 : i32, i32
  }
  func.func @transform_6(%arg0: i32) -> (i32, i32) {
    %c0_i32 = arith.constant 0 : i32
    %c0_i32_0 = arith.constant 0 : i32
    %c0_i32_1 = arith.constant 0 : i32
    return %c0_i32, %c0_i32_0 : i32, i32
  }
  func.func @transform_7(%arg0: i32) -> (i32, i32) {
    %c0_i32 = arith.constant 0 : i32
    %c0_i32_0 = arith.constant 0 : i32
    %c0_i32_1 = arith.constant 0 : i32
    return %c0_i32, %c0_i32_0 : i32, i32
  }
  func.func @transform_8(%arg0: i32) -> (i32, i32) {
    %c0_i32 = arith.constant 0 : i32
    %c0_i32_0 = arith.constant 0 : i32
    %c0_i32_1 = arith.constant 0 : i32
    return %c0_i32, %c0_i32_0 : i32, i32
  }
  func.func @transform_9(%arg0: i32) -> (i32, i32) {
    %c0_i32 = arith.constant 0 : i32
    %c0_i32_0 = arith.constant 0 : i32
    %c0_i32_1 = arith.constant 0 : i32
    return %c0_i32, %c0_i32_0 : i32, i32
  }
  func.func @transform_10(%arg0: i32) -> (i32, i32) {
    %c0_i32 = arith.constant 0 : i32
    %c0_i32_0 = arith.constant 0 : i32
    return %arg0, %c0_i32 : i32, i32
  }
  func.func @transform_11(%arg0: i32) -> (i32, i32) {
    %c0_i32 = arith.constant 0 : i32
    %c0_i32_0 = arith.constant 0 : i32
    return %arg0, %c0_i32 : i32, i32
  }
  func.func @transform_12(%arg0: i32) -> (i32, i32) {
    %c0_i32 = arith.constant 0 : i32
    %c0_i32_0 = arith.constant 0 : i32
    return %arg0, %c0_i32 : i32, i32
  }
}

</mosaic_0001>

<bundles_post_ra>
// kernel: tpu_custom_call.1
= control target key start
LH: loop header
LB: loop body
LE: loop exit
PB: predicated region body
PF: predicated region fallthrough
CT: control target
= control target key end

     0   :  { %18 = vsyncpa [#allocation3], 0  ;;  %s1081_s0 = inlined_call_operand.hbm [shape: f32[16,32], index: 0, kind: input, shape index: {}]   ;;  %s1082_s1 = inlined_call_operand.hbm [shape: f32[16,32], index: 1, kind: input, shape index: {}]   ;;  %s1083_s2 = inlined_call_operand.hbm [shape: f32[16,32], index: 2, kind: input, shape index: {}]   ;;  %s1084_s3 = inlined_call_operand.hbm [shape: f32[16,32], index: 3, kind: input, shape index: {}]   ;;  %s1085_s4 = inlined_call_operand.hbm [shape: f32[32,32], index: 4, kind: input, shape index: {}]   ;;  %s1086_s5 = inlined_call_operand.vmem [shape: f32[1,32], index: 5, kind: input, shape index: {}]   ;;  %s1087_s6 = inlined_call_operand.hbm [shape: f32[32,32], index: 6, kind: input, shape index: {}]   ;;  %s1088_s7 = inlined_call_operand.vmem [shape: f32[1,32], index: 7, kind: input, shape index: {}]   ;;  %s1089_s8 = inlined_call_operand.hbm [shape: f32[32,32], index: 8, kind: input, shape index: {}]   ;;  %s1090_s9 = inlined_call_operand.vmem [shape: f32[1,32], index: 9, kind: input, shape index: {}]   ;;  %s1091_s10 = inlined_call_operand.hbm [shape: f32[16,32], index: 10, kind: output, shape index: {0}]   ;;  %s1092_s11 = inlined_call_operand.hbm [shape: f32[16,32], index: 11, kind: output, shape index: {1}]   ;;  %s1093_s12 = inlined_call_operand.hbm [shape: f32[16,32], index: 12, kind: output, shape index: {2}]  }
   0x1   :  { %19 = vsyncpa [#allocation6], 0 }
   0x2   :  { %20 = vsyncpa [#allocation9], 0 }
   0x3   :  { %21 = vsyncpa [#allocation12], 0 }
   0x4   :  { %22 = vsyncpa [#allocation4], 0 }
   0x5   :  { %23 = vsyncpa [#allocation16], 0  ;;  %s805_s21 = smov [#allocation5]   ;;  %s806_s23 = smov [#allocation8]  }
   0x6   :  { %s41_s22 = sshll.u32 %s805_s21, 4  ;;  %s65_s24 = sshll.u32 %s806_s23, 4  ;;  %s42_s22 = int_to_ptr.vmem [resolvable:$true] %s41_s22  ;;  %s882_s24 = int_to_ptr.vmem [resolvable:$true] %s65_s24 }
   0x7   :  { %s573_s27 = scalar_lea.hbm %s1082_s1, 256 }
   0x8   :  { %p574_p0 = scmp.ne.s32.totalorder %s1082_s1, %s573_s27  ;;  %p577_p1 = scmp.lt.u32.totalorder %s573_s27, %s1082_s1 }
   0xa   :  { %p579_p2 = pnand %p577_p1, %p574_p0 }
   0xc   :  { %582 = shalt.err (!%p579_p2)
}
   0xd   :  { %s583_s14 = scalar_lea.vmem %s42_s22, 256  ;;  %p588_p4 = scmp.lt.s32.totalorder %s42_s22, %s42_s22 }
   0xe   :  { %p584_p3 = scmp.ne.s32.totalorder %s42_s22, %s583_s14  ;;  %p589_p5 = scmp.lt.s32.totalorder %s583_s14, %s583_s14 }
  0x10   :  { %p590_p6 = por %p589_p5, %p588_p4 }
  0x12   :  { %p591_p7 = pnand %p590_p6, %p584_p3 }
  0x14   :  { %594 = shalt.err (!%p591_p7)
}
  0x15   :  { %s807_s15 = smov 128   ;;  %s808_s16 = smov 8  }
  0x16   :  { %47 = dma.hbm_to_vmem [thread:$0]  %s1082_s1, 256, %s42_s22, [#allocation6], %s807_s15, %s807_s15, %s808_s16  }
  0x17   :  { %s595_s21 = scalar_lea.hbm %s1084_s3, 256 }
  0x18   :  { %p596_p8 = scmp.ne.s32.totalorder %s1084_s3, %s595_s21  ;;  %p599_p9 = scmp.lt.u32.totalorder %s595_s21, %s1084_s3 }
  0x1a   :  { %p601_p10 = pnand %p599_p9, %p596_p8 }
  0x1c   :  { %604 = shalt.err (!%p601_p10)
}
  0x1d   :  { %s605_s28 = scalar_lea.vmem %s882_s24, 256  ;;  %p610_p12 = scmp.lt.s32.totalorder %s882_s24, %s882_s24 }
  0x1e   :  { %p606_p11 = scmp.ne.s32.totalorder %s882_s24, %s605_s28  ;;  %p611_p13 = scmp.lt.s32.totalorder %s605_s28, %s605_s28 }
  0x20   :  { %p612_p0 = por %p611_p13, %p610_p12 }
  0x22   :  { %p613_p1 = pnand %p612_p0, %p606_p11 }
  0x24   :  { %616 = shalt.err (!%p613_p1)
}
  0x25   :  { %71 = dma.hbm_to_vmem [thread:$0]  %s1084_s3, 256, %s882_s24, [#allocation9], %s807_s15, %s807_s15, %s808_s16  }
  0x26   :  { %s809_s29 = smov [#allocation11]   ;;  %s810_s13 = smov [#allocation2]  }
  0x27   :  { %s91_s30 = sshll.u32 %s809_s29, 4  ;;  %s29_s14 = sshll.u32 %s810_s13, 4  ;;  %s92_s30 = int_to_ptr.vmem [resolvable:$true] %s91_s30  ;;  %s919_s14 = int_to_ptr.vmem [resolvable:$true] %s29_s14 }
  0x28   :  { %s617_s19 = scalar_lea.hbm %s1087_s6, 512 }
  0x29   :  { %p618_p2 = scmp.ne.s32.totalorder %s1087_s6, %s617_s19  ;;  %p621_p3 = scmp.lt.u32.totalorder %s617_s19, %s1087_s6 }
  0x2b   :  { %p623_p4 = pnand %p621_p3, %p618_p2 }
  0x2d   :  { %626 = shalt.err (!%p623_p4)
}
  0x2e   :  { %s627_s3 = scalar_lea.vmem %s92_s30, 512  ;;  %p632_p6 = scmp.lt.s32.totalorder %s92_s30, %s92_s30 }
  0x2f   :  { %p628_p5 = scmp.ne.s32.totalorder %s92_s30, %s627_s3  ;;  %p633_p7 = scmp.lt.s32.totalorder %s627_s3, %s627_s3 }
  0x31   :  { %p634_p8 = por %p633_p7, %p632_p6 }
  0x33   :  { %p635_p9 = pnand %p634_p8, %p628_p5 }
  0x35   :  { %638 = shalt.err (!%p635_p9)
}
  0x36   :  { %97 = dma.hbm_to_vmem [thread:$0]  %s1087_s6, 512, %s92_s30, [#allocation12], %s807_s15, %s807_s15, %s808_s16  }
  0x37   :  { %s639_s1 = scalar_lea.hbm %s1081_s0, 256 }
  0x38   :  { %p640_p10 = scmp.ne.s32.totalorder %s1081_s0, %s639_s1  ;;  %p643_p11 = scmp.lt.u32.totalorder %s639_s1, %s1081_s0 }
  0x3a   :  { %p645_p12 = pnand %p643_p11, %p640_p10 }
  0x3c   :  { %648 = shalt.err (!%p645_p12)
}
  0x3d   :  { %s649_s18 = scalar_lea.vmem %s919_s14, 256  ;;  %p654_p0 = scmp.lt.s32.totalorder %s919_s14, %s919_s14 }
  0x3e   :  { %p650_p13 = scmp.ne.s32.totalorder %s919_s14, %s649_s18  ;;  %p655_p1 = scmp.lt.s32.totalorder %s649_s18, %s649_s18 }
  0x40   :  { %p656_p2 = por %p655_p1, %p654_p0 }
  0x42   :  { %p657_p3 = pnand %p656_p2, %p650_p13 }
  0x44   :  { %660 = shalt.err (!%p657_p3)
}
  0x45   :  { %35 = dma.hbm_to_vmem [thread:$0]  %s1081_s0, 256, %s919_s14, [#allocation3], %s807_s15, %s807_s15, %s808_s16  }
  0x46   :  { %s811_s19 = smov [#allocation7]   ;;  %s812_s21 = smov [#allocation10]  }
  0x47   :  { %s53_s20 = sshll.u32 %s811_s19, 4  ;;  %s77_s23 = sshll.u32 %s812_s21, 4  ;;  %s54_s20 = int_to_ptr.vmem [resolvable:$true] %s53_s20  ;;  %s956_s23 = int_to_ptr.vmem [resolvable:$true] %s77_s23 }
  0x48   :  { %s661_s24 = scalar_lea.hbm %s1083_s2, 256 }
  0x49   :  { %p662_p4 = scmp.ne.s32.totalorder %s1083_s2, %s661_s24  ;;  %p665_p5 = scmp.lt.u32.totalorder %s661_s24, %s1083_s2 }
  0x4b   :  { %p667_p6 = pnand %p665_p5, %p662_p4 }
  0x4d   :  { %670 = shalt.err (!%p667_p6)
}
  0x4e   :  { %s671_s0 = scalar_lea.vmem %s54_s20, 256  ;;  %p676_p8 = scmp.lt.s32.totalorder %s54_s20, %s54_s20 }
  0x4f   :  { %p672_p7 = scmp.ne.s32.totalorder %s54_s20, %s671_s0  ;;  %p677_p9 = scmp.lt.s32.totalorder %s671_s0, %s671_s0 }
  0x51   :  { %p678_p10 = por %p677_p9, %p676_p8 }
  0x53   :  { %p679_p11 = pnand %p678_p10, %p672_p7 }
  0x55   :  { %682 = shalt.err (!%p679_p11)
}
  0x56   :  { %59 = dma.hbm_to_vmem [thread:$0]  %s1083_s2, 256, %s54_s20, [#allocation6], %s807_s15, %s807_s15, %s808_s16  }
  0x57   :  { %s683_s17 = scalar_lea.hbm %s1085_s4, 512 }
  0x58   :  { %p684_p12 = scmp.ne.s32.totalorder %s1085_s4, %s683_s17  ;;  %p687_p13 = scmp.lt.u32.totalorder %s683_s17, %s1085_s4 }
  0x5a   :  { %p689_p0 = pnand %p687_p13, %p684_p12 }
  0x5c   :  { %692 = shalt.err (!%p689_p0)
}
  0x5d   :  { %s693_s21 = scalar_lea.vmem %s956_s23, 512  ;;  %p698_p2 = scmp.lt.s32.totalorder %s956_s23, %s956_s23 }
  0x5e   :  { %p694_p1 = scmp.ne.s32.totalorder %s956_s23, %s693_s21  ;;  %p699_p3 = scmp.lt.s32.totalorder %s693_s21, %s693_s21 }
  0x60   :  { %p700_p4 = por %p699_p3, %p698_p2 }
  0x62   :  { %p701_p5 = pnand %p700_p4, %p694_p1 }
  0x64   :  { %704 = shalt.err (!%p701_p5)
}
  0x65   :  { %83 = dma.hbm_to_vmem [thread:$0]  %s1085_s4, 512, %s956_s23, [#allocation9], %s807_s15, %s807_s15, %s808_s16  }
  0x66   :  { %s813_s25 = smov [#allocation13]   ;;  %s705_s27 = scalar_lea.hbm %s1089_s8, 512 }
  0x67   :  { %s105_s3 = sshll.u32 %s813_s25, 4  ;;  %p706_p6 = scmp.ne.s32.totalorder %s1089_s8, %s705_s27  ;;  %s106_s3 = int_to_ptr.vmem [resolvable:$true] %s105_s3 }
  0x68   :  { %p709_p7 = scmp.lt.u32.totalorder %s705_s27, %s1089_s8 }
  0x6a   :  { %p711_p8 = pnand %p709_p7, %p706_p6 }
  0x6c   :  { %714 = shalt.err (!%p711_p8)
}
  0x6d   :  { %s715_s22 = scalar_lea.vmem %s106_s3, 512  ;;  %p720_p10 = scmp.lt.s32.totalorder %s106_s3, %s106_s3 }
  0x6e   :  { %p716_p9 = scmp.ne.s32.totalorder %s106_s3, %s715_s22  ;;  %p721_p11 = scmp.lt.s32.totalorder %s715_s22, %s715_s22 }
  0x70   :  { %p722_p12 = por %p721_p11, %p720_p10 }
  0x72   :  { %p723_p13 = pnand %p722_p12, %p716_p9 }
  0x74   :  { %726 = shalt.err (!%p723_p13)
}
  0x75   :  { %111 = dma.hbm_to_vmem [thread:$0]  %s1089_s8, 512, %s106_s3, [#allocation12], %s807_s15, %s807_s15, %s808_s16  }
  0x76   :  { %793 = dma.done.wait [#allocation3], 256  }
  0x77   :  { %794 = vsyncadd [#allocation3], 4294967040 }
  0x78   :  { %795 = dma.done.wait [#allocation6], 512  }
  0x79   :  { %796 = vsyncadd [#allocation6], 4294966784 }
  0x7a   :  { %797 = dma.done.wait [#allocation9], 768  }
  0x7b   :  { %798 = vsyncadd [#allocation9], 4294966528 }
  0x7c   :  { %799 = dma.done.wait [#allocation12], 1024  }
  0x7d   :  { %800 = vsyncadd [#allocation12], 4294966272  ;;  %v139_v0 = vld [vmem:[#allocation10] sm:$0xff]  ;;  %v140_v1 = vld [vmem:[#allocation10 + $0x8] sm:$0xff]  ;;  %vm150_vm0 = vcmask 261120   ;;  %s814_s18 = smov [#allocation14]  }
  0x7e   :  { %v141_v2 = vld [vmem:[#allocation10 + $0x10] sm:$0xff]  ;;  %v537_v3 = vpack.c.bf16 %v140_v1, %v139_v0  ;;  %v142_v4 = vld [vmem:[#allocation10 + $0x18] sm:$0xff]  ;;  %v232_v5 = vld [vmem:[#allocation11] sm:$0xff]  ;;  %s431_s6 = sshll.u32 %s814_s18, 4  ;;  %s815_s30 = smov [#allocation15]   ;;  %s432_s6 = int_to_ptr.vmem [resolvable:$true] %s431_s6 }
  0x7f   :  { %v233_v6 = vld [vmem:[#allocation11 + $0x8] sm:$0xff]  ;;  %v541_v7 = vpack.c.bf16 %v142_v4, %v141_v2  ;;  %v135_v9 = vld [vmem:[#allocation2] sm:$0xff]  ;;  %v234_v12 = vld [vmem:[#allocation11 + $0x10] sm:$0xff]  ;;  %s443_s19 = sshll.u32 %s815_s30, 4  ;;  %s727_s21 = scalar_lea.vmem %s432_s6, 256  ;;  %s1021_s19 = int_to_ptr.vmem [resolvable:$true] %s443_s19 }
  0x80   :  { %v545_v8 = vpack.c.bf16 %v233_v6, %v232_v5  ;;  %v324_v10 = vld [vmem:[#allocation13] sm:$0xff]  ;;  %538 = vmatprep.subr.bf16.mxu0 %v537_v3  ;;  %512 = vmatprep.mubr.msk.f32.mxu0 %vm150_vm0, %v135_v9  ;;  %v325_v11 = vld [vmem:[#allocation13 + $0x8] sm:$0xff]  ;;  %v235_v13 = vld [vmem:[#allocation11 + $0x18] sm:$0xff]  ;;  %p728_p0 = scmp.ne.s32.totalorder %s432_s6, %s727_s21  ;;  %p732_p1 = scmp.lt.s32.totalorder %s432_s6, %s432_s6 }
  0x81   :  { %540 = vmatpush3.bf16.msra.mxu0 %v537_v3  ;;  %v549_v14 = vpack.c.bf16 %v235_v13, %v234_v12  ;;  %v137_v15 = vld [vmem:[#allocation5] sm:$0xff]  ;;  %v553_v16 = vpack.c.bf16 %v325_v11, %v324_v10  ;;  %v327_v18 = vld [vmem:[#allocation13 + $0x18] sm:$0xff]  ;;  %v136_v19 = vld [vmem:[#allocation2 + $0x8] sm:$0xff]  ;;  %p733_p2 = scmp.lt.s32.totalorder %s727_s21, %s727_s21 }
  0x82   :  { %546 = vmatprep.subr.bf16.mxu1 %v545_v8  ;;  %542 = vmatprep.subr.bf16.mxu0 %v541_v7  ;;  %v326_v17 = vld [vmem:[#allocation13 + $0x10] sm:$0xff]  ;;  %v138_v21 = vld [vmem:[#allocation5 + $0x8] sm:$0xff]  ;;  %v477_v22 = vld [vmem:[%s1086_s5] ss:$0 sm:$0xff] }
  0x83   :  { %548 = vmatpush3.bf16.msra.mxu1 %v545_v8  ;;  %523 = vmatprep.mubr.msk.f32.mxu1 %vm150_vm0, %v137_v15  ;;  %v557_v20 = vpack.c.bf16 %v327_v18, %v326_v17  ;;  %v480_v23 = vld [vmem:[%s1088_s7] ss:$0 sm:$0xff]  ;;  %v415_v28 = vld [vmem:[#allocation7 + $0x8] sm:$0xff]  ;;  %p734_p3 = por %p733_p2, %p732_p1 }
  0x84   :  { %550 = vmatprep.subr.bf16.mxu1 %v549_v14  ;;  %v414_v32 = vld [vmem:[#allocation7] sm:$0xff] }
  0x85   :  { %544 = vmatpush3.bf16.msra.mxu0 %v541_v7  ;;  %v483_v38 = vld [vmem:[%s1090_s9] ss:$0 sm:$0xff]  ;;  %p735_p4 = pnand %p734_p3, %p728_p0 }
  0x86   :  { %554 = vmatprep.subr.bf16.mxu0 %v553_v16 }
  0x87   :  { %552 = vmatpush3.bf16.msra.mxu1 %v549_v14 }
  0x88   :  { %513 = vmatmul.mubr.msk.f32.vlgmr.msra.gmra.mrb[0].mxu0 %vm150_vm0, %v136_v19 }
  0x89   :  { %556 = vmatpush3.bf16.msra.mxu0 %v553_v16  ;;  %534 = vmatprep.mubr.msk.f32.mxu0 %vm150_vm0, %v137_v15 }
  0x8a   :  { %524 = vmatmul.mubr.msk.f32.vlgmr.msra.gmra.mrb[0].mxu1 %vm150_vm0, %v138_v21  ;;  %558 = vmatprep.subr.bf16.mxu0 %v557_v20 }
  0x8d   :  { %560 = vmatpush3.bf16.msra.mxu0 %v557_v20 }
  0x90   :  { %535 = vmatmul.mubr.msk.f32.vlgmr.msra.gmra.mrb[2].mxu0 %vm150_vm0, %v138_v21 }
 0x15b   :  { %v514_v24 = vpop.f32.mrb[0].mxu0 }
 0x15c   :  { %v229_v25 = vadd.f32 %v514_v24, %v477_v22  ;;  %v223_v26 = vpop.f32.mrb[1].mxu0 }
 0x15d   :  { %v525_v27 = vpop.f32.mrb[0].mxu1  ;;  %v224_v29 = vadd.f32 %v477_v22, %v223_v26 }
 0x15e   :  { %v321_v30 = vadd.f32 %v525_v27, %v480_v23  ;;  %v315_v31 = vpop.f32.mrb[1].mxu1  ;;  %v411_v33 = vmul.f32 0.25, %v229_v25 }
 0x15f   :  { %v316_v34 = vadd.f32 %v480_v23, %v315_v31  ;;  %v410_v35 = vmul.f32 0.25, %v224_v29 }
 0x160   :  { %v417_v36 = vadd.f32 %v415_v28, %v321_v30  ;;  %413 = vst.msk [vmem:[#allocation14 + $0x8] sm:$0xff] %vm150_vm0, %v411_v33 }
 0x161   :  { %v416_v37 = vadd.f32 %v414_v32, %v316_v34  ;;  %412 = vst.msk [vmem:[#allocation14] sm:$0xff] %vm150_vm0, %v410_v35 }
 0x162   :  { %419 = vst.msk [vmem:[#allocation15 + $0x8] sm:$0xff] %vm150_vm0, %v417_v36 }
 0x163   :  { %418 = vst.msk [vmem:[#allocation15] sm:$0xff] %vm150_vm0, %v416_v37 }
 0x164   :  { %738 = shalt.err (!%p735_p4)
}
 0x165   :  { %s739_s25 = scalar_lea.hbm %s1091_s10, 256 }
 0x166   :  { %p740_p5 = scmp.ne.s32.totalorder %s1091_s10, %s739_s25  ;;  %p743_p6 = scmp.lt.u32.totalorder %s739_s25, %s1091_s10 }
 0x168   :  { %p745_p7 = pnand %p743_p6, %p740_p5 }
 0x16a   :  { %748 = shalt.err (!%p745_p7)
}
 0x16b   :  { %437 = dma.vmem_to_hbm [thread:$0]  %s432_s6, 256, %s1091_s10, [#allocation4], %s807_s15, %s807_s15, %s808_s16   ;;  %v536_v39 = vpop.f32.mrb[2].mxu0  ;;  %v421_v40 = vld [vmem:[#allocation8 + $0x8] sm:$0xff] }
 0x16c   :  { %s749_s1 = scalar_lea.vmem %s1021_s19, 256  ;;  %p754_p9 = scmp.lt.s32.totalorder %s1021_s19, %s1021_s19 }
 0x16d   :  { %p750_p8 = scmp.ne.s32.totalorder %s1021_s19, %s749_s1  ;;  %p755_p10 = scmp.lt.s32.totalorder %s749_s1, %s749_s1 }
 0x16f   :  { %p756_p11 = por %p755_p10, %p754_p9 }
 0x171   :  { %p757_p12 = pnand %p756_p11, %p750_p8 }
 0x173   :  { %760 = shalt.err (!%p757_p12)
}
 0x174   :  { %s761_s22 = scalar_lea.hbm %s1092_s11, 256 }
 0x175   :  { %p762_p13 = scmp.ne.s32.totalorder %s1092_s11, %s761_s22  ;;  %p765_p0 = scmp.lt.u32.totalorder %s761_s22, %s1092_s11 }
 0x177   :  { %p767_p1 = pnand %p765_p0, %p762_p13 }
 0x179   :  { %770 = shalt.err (!%p767_p1)
}
 0x17a   :  { %449 = dma.vmem_to_hbm [thread:$0]  %s1021_s19, 256, %s1092_s11, [#allocation16], %s807_s15, %s807_s15, %s808_s16   ;;  %v407_v41 = vadd.f32 %v536_v39, %v483_v38  ;;  %v401_v42 = vpop.f32.mrb[3].mxu0  ;;  %v420_v43 = vld [vmem:[#allocation8] sm:$0xff] }
 0x17b   :  { %s816_s17 = smov [#allocation17]   ;;  %v402_v44 = vadd.f32 %v483_v38, %v401_v42 }
 0x17c   :  { %s455_s18 = sshll.u32 %s816_s17, 4  ;;  %v423_v45 = vadd.f32 %v421_v40, %v407_v41  ;;  %s456_s18 = int_to_ptr.vmem [resolvable:$true] %s455_s18 }
 0x17d   :  { %v422_v46 = vadd.f32 %v420_v43, %v402_v44  ;;  %s771_s6 = scalar_lea.vmem %s456_s18, 256  ;;  %p776_p3 = scmp.lt.s32.totalorder %s456_s18, %s456_s18 }
 0x17e   :  { %425 = vst.msk [vmem:[#allocation17 + $0x8] sm:$0xff] %vm150_vm0, %v423_v45  ;;  %p772_p2 = scmp.ne.s32.totalorder %s456_s18, %s771_s6  ;;  %p777_p4 = scmp.lt.s32.totalorder %s771_s6, %s771_s6 }
 0x17f   :  { %424 = vst.msk [vmem:[#allocation17] sm:$0xff] %vm150_vm0, %v422_v46 }
 0x180   :  { %p778_p5 = por %p777_p4, %p776_p3 }
 0x182   :  { %p779_p6 = pnand %p778_p5, %p772_p2 }
 0x184   :  { %782 = shalt.err (!%p779_p6)
}
 0x185   :  { %s783_s19 = scalar_lea.hbm %s1093_s12, 256 }
 0x186   :  { %p784_p7 = scmp.ne.s32.totalorder %s1093_s12, %s783_s19  ;;  %p787_p8 = scmp.lt.u32.totalorder %s783_s19, %s1093_s12 }
 0x188   :  { %p789_p9 = pnand %p787_p8, %p784_p7 }
 0x18a   :  { %792 = shalt.err (!%p789_p9)
}
 0x18b   :  { %461 = dma.vmem_to_hbm [thread:$0]  %s456_s18, 256, %s1093_s12, [#allocation16], %s807_s15, %s807_s15, %s808_s16  }
 0x18c   :  { %801 = dma.done.wait [#allocation4], 256  }
 0x18d   :  { %802 = vsyncadd [#allocation4], 4294967040 }
 0x18e   :  { %803 = dma.done.wait [#allocation16], 512  }
 0x18f   :  { %804 = vsyncadd [#allocation16], 4294966784 }
 0x190   :  { %471 = vsyncpa [#allocation3], 1 }
 0x191   :  { %472 = vsyncpa [#allocation6], 1 }
 0x192   :  { %473 = vsyncpa [#allocation9], 1 }
 0x193   :  { %474 = vsyncpa [#allocation12], 1 }
 0x194   :  { %475 = vsyncpa [#allocation4], 1 }
 0x195   :  { %476 = vsyncpa [#allocation16], 1 }

</bundles_post_ra>
